<compile_context>
chip_gen: v5e
topology: v5e:2x2
jax: 0.10.0
libtpu: 0.0.40
codegen_flags: <defaults>
</compile_context>

<pallas_src>
import jax
import jax.numpy as jnp
from jax import lax
from jax.experimental import pallas as pl
from jax.experimental.pallas import tpu as pltpu

KERNEL_SIZE = 9  # matches SpatialAttention(kernel_size=9)


def _spatial_attention_kernel(x_ref, halo_ref, w_ref, o_ref):
    # x_ref   : (bn, C, TL)      tile of x (native dtype), VMEM
    # halo_ref: (bn, 1, 2, 256)  pre-pooled conv halo, f32, VMEM
    #           rows: [mean, max]; lanes [124:128] = left halo, [128:132] = right halo
    # w_ref   : (2, K)           conv taps, f32, SMEM scalars
    # o_ref   : (bn, C, TL)      output tile, VMEM
    f32 = jnp.float32
    xs = x_ref[...]                                   # (bn, C, TL) — native dtype
    bn, C, TL = xs.shape
    hal = halo_ref[...][:, 0]                         # (bn, 2, 256)
    K = w_ref.shape[1]
    P = K // 2
    inv_c = 1.0 / C

    # Channel pooling (single sweep each over the resident tile).
    mean_c = jnp.sum(xs, axis=1, dtype=f32) * inv_c   # (bn, TL)
    max_c = jnp.max(xs, axis=1).astype(f32)           # (bn, TL)

    # Extended pooled maps: [left 128 lanes | center TL | right 128 lanes], all pieces
    # lane-aligned; ext lane i corresponds to global column l*TL + (i - 128).
    mean_ext = jnp.concatenate([hal[:, 0, :128], mean_c, hal[:, 0, 128:]], axis=-1)
    max_ext = jnp.concatenate([hal[:, 1, :128], max_c, hal[:, 1, 128:]], axis=-1)

    # 9-tap cross-correlation on the tiny C-reduced map (statically unrolled).
    conv = jnp.zeros((bn, TL), f32)
    for k in range(K):
        off = 128 + k - P                             # 124..132, only touches valid lanes
        conv = (conv
                + w_ref[0, k] * mean_ext[:, off:off + TL]
                + w_ref[1, k] * max_ext[:, off:off + TL])

    # sigmoid (exp on the EUP; exact reciprocal keeps numerics close to the reference).
    attn = pl.reciprocal(1.0 + jnp.exp(-conv), approx=False)      # (bn, TL) f32

    # Final scale: broadcast attn over channels, multiply in x's native dtype.
    o_ref[...] = (attn[:, None, :].astype(xs.dtype) * x_ref[...]).astype(o_ref.dtype)


def _vmem_budget_bytes():
    """Scoped-VMEM budget: 75% of physical per-core VMEM, capped at 96 MiB."""
    try:
        cap = int(pltpu.get_tpu_info().vmem_capacity_bytes)
    except Exception:
        cap = 64 * 1024 * 1024        # conservative fallback (v7x per-core VMEM)
    return max(32 * 1024 * 1024, min((cap * 3) // 4, 96 * 1024 * 1024))


def spatial_attention(x, w, *, tile_l=None, bn=None):
    """x: (N, C, L); w: (2, K) Conv1d weight with the out-channel dim squeezed."""
    N, C, L = x.shape
    K = w.shape[-1]
    assert w.shape == (2, K) and K % 2 == 1
    P = K // 2
    assert P <= 128, "kernel halo wider than one lane group is not supported"
    f32 = jnp.float32
    itemsize = jnp.dtype(x.dtype).itemsize

    # Pad L to a multiple of 128: zero columns pool to 0 for both mean and max, which is
    # exactly Conv1d's zero padding, so results on the first L columns are unchanged.
    L_pad = ((L + 127) // 128) * 128
    x_p = x if L_pad == L else jnp.pad(x, ((0, 0), (0, 0), (0, L_pad - L)))

    budget = _vmem_budget_bytes()
    sub = 8 * max(1, 4 // itemsize)                  # sublane packing: f32 8, bf16 16, int8 32
    c_pad = ((C + sub - 1) // sub) * sub             # VMEM sublane padding of the C dim

    def vmem_estimate(bn_, tl_):
        xo = 2 * 2 * bn_ * c_pad * tl_ * itemsize    # x + o blocks, double-buffered
        temps = 10 * bn_ * (tl_ + 256) * 4           # f32 pooled/ext/conv temporaries
        halo_b = 2 * bn_ * 2 * 256 * 4               # halo blocks, double-buffered
        return xo + temps + halo_b

    # Largest multiple-of-128 divisor of L_pad that fits the VMEM budget (bn = 1).
    if tile_l is None:
        tile_l = 128
        t = 128
        while t <= L_pad:
            if L_pad % t == 0 and vmem_estimate(1, t) <= budget:
                tile_l = t
            t += 128
    assert L_pad % tile_l == 0 and tile_l % 128 == 0, "bad tile_l"

    # Grow the block along N (important when C is small) while staying inside the budget.
    if bn is None:
        bn = 1
        for b in range(1, N + 1):
            if N % b == 0 and vmem_estimate(b, tile_l) <= budget:
                bn = b
    assert N % bn == 0, "bad bn"

    T = L_pad // tile_l

    # --- Pre-pooled conv halos (replaces the old full-C 128-column halo DMAs). ---
    # For tile l: left halo = pooled cols [l*TL-P, l*TL) (= last P cols of tile l-1),
    #             right halo = pooled cols [(l+1)*TL, (l+1)*TL+P) (= first P cols of tile l+1),
    # zero outside [0, L_pad) — matching Conv1d zero padding.
    x_t = x_p.reshape(N, C, T, tile_l)
    first = x_t[..., :P].astype(f32)                 # (N, C, T, P)
    last = x_t[..., tile_l - P:].astype(f32)         # (N, C, T, P)
    first_mean = jnp.mean(first, axis=1)             # (N, T, P)
    first_max = jnp.max(first, axis=1)
    last_mean = jnp.mean(last, axis=1)
    last_max = jnp.max(last, axis=1)
    zP = jnp.zeros((N, 1, P), f32)
    left_mean = jnp.concatenate([zP, last_mean[:, :-1]], axis=1)     # (N, T, P)
    left_max = jnp.concatenate([zP, last_max[:, :-1]], axis=1)
    right_mean = jnp.concatenate([first_mean[:, 1:], zP], axis=1)    # (N, T, P)
    right_max = jnp.concatenate([first_max[:, 1:], zP], axis=1)
    zpad = jnp.zeros((N, T, 128 - P), f32)
    mean_halo = jnp.concatenate([zpad, left_mean, right_mean, zpad], axis=-1)   # (N, T, 256)
    max_halo = jnp.concatenate([zpad, left_max, right_max, zpad], axis=-1)      # (N, T, 256)
    halo = jnp.stack([mean_halo, max_halo], axis=2)                             # (N, T, 2, 256)

    w32 = jnp.asarray(w, f32)

    center_map = lambda n, l: (n, 0, l)
    halo_map = lambda n, l: (n, l, 0, 0)

    # TODO(synk): if N == 1 and T is small on v7x, consider CORE_PARALLEL / core_map to
    # guarantee the grid shards across both TensorCores.
    out = pl.pallas_call(
        _spatial_attention_kernel,
        out_shape=jax.ShapeDtypeStruct((N, C, L_pad), x.dtype),
        grid=(N // bn, T),
        in_specs=[
            pl.BlockSpec((bn, C, tile_l), center_map),                 # x tile
            pl.BlockSpec((bn, 1, 2, 256), halo_map),                   # pre-pooled halo
            pl.BlockSpec(memory_space=pltpu.MemorySpace.SMEM),         # conv taps
        ],
        out_specs=pl.BlockSpec((bn, C, tile_l), center_map),
        compiler_params=pltpu.CompilerParams(
            dimension_semantics=("parallel", "parallel"),
            vmem_limit_bytes=int(budget),
        ),
    )(x_p, halo, w32)

    return out if L_pad == L else out[:, :, :L]


def spatial_attention_reference(x, w):
    """Pure-JAX reference reproducing the PyTorch forward exactly."""
    avg = jnp.mean(x, axis=1, keepdims=True)          # (N, 1, L)
    mx = jnp.max(x, axis=1, keepdims=True)            # (N, 1, L)
    cat = jnp.concatenate([avg, mx], axis=1)          # (N, 2, L)
    K = w.shape[1]
    conv = lax.conv_general_dilated(
        cat, w[None, :, :], window_strides=(1,),
        padding=[(K // 2, K // 2)],
        dimension_numbers=("NCH", "OIH", "NCH"),
    )                                                 # (N, 1, L)
    return jax.nn.sigmoid(conv) * x


if __name__ == "__main__":
    key = jax.random.PRNGKey(0)
    kx1, kx2, kw = jax.random.split(key, 3)

    # Conv1d(2, 1, 9, bias=False) weight with the out-channel dim squeezed -> (2, 9).
    fan_in = 2 * KERNEL_SIZE
    bound = (1.0 / fan_in) ** 0.5
    w = jax.random.uniform(kw, (2, KERNEL_SIZE), dtype=jnp.float32,
                           minval=-bound, maxval=bound)

    # Case 1: default tiling (large blocks, typically one grid step at this small size).
    N, C, L = 2, 8, 512
    x1 = jax.random.normal(kx1, (N, C, L), dtype=jnp.float32)
    out1 = jax.block_until_ready(spatial_attention(x1, w))
    ref1 = spatial_attention_reference(x1, w)
    assert out1.shape == x1.shape and out1.dtype == x1.dtype
    assert jnp.allclose(out1, ref1, atol=1e-5, rtol=1e-5), "default path mismatch vs reference"

    # Case 2: forced multi-tile path — exercises cross-tile conv halos and pipelining.
    out2 = jax.block_until_ready(spatial_attention(x1, w, tile_l=128, bn=1))
    assert jnp.allclose(out2, ref1, atol=1e-5, rtol=1e-5), "tiled/halo path mismatch vs reference"

    # Case 3: L not a multiple of 128 — zero-pad path.
    N3, C3, L3 = 2, 4, 48
    x3 = jax.random.normal(kx2, (N3, C3, L3), dtype=jnp.float32)
    out3 = jax.block_until_ready(spatial_attention(x3, w))
    ref3 = spatial_attention_reference(x3, w)
    assert out3.shape == x3.shape and out3.dtype == x3.dtype
    assert jnp.allclose(out3, ref3, atol=1e-5, rtol=1e-5), "padded path mismatch vs reference"

    print("KERNEL_OK")
</pallas_src>

<mosaic_0001>
module attributes {stable_mosaic.version = 11 : i64} {
  func.func @_spatial_attention_kernel(%arg0: i32, %arg1: i32, %arg2: memref<2x8x512xf32, #tpu.memory_space<vmem>>, %arg3: memref<2x1x2x256xf32, #tpu.memory_space<vmem>>, %arg4: memref<2x9xf32, #tpu.memory_space<smem>>, %arg5: memref<2x8x512xf32, #tpu.memory_space<vmem>>) attributes {dimension_semantics = [#tpu.dimension_semantics<parallel>, #tpu.dimension_semantics<parallel>], iteration_bounds = array<i64: 1, 1>, scalar_prefetch = 0 : i64, scratch_operands = 0 : i64, tpu.core_type = #tpu.core_type<tc>, window_params = [{transform_indices = @transform_0, window_bounds = array<i64: 2, 8, 512>}, {transform_indices = @transform_1, window_bounds = array<i64: 2, 1, 2, 256>}, {transform_indices = @transform_2, window_bounds = array<i64: 2, 9>}, {transform_indices = @transform_3, window_bounds = array<i64: 2, 8, 512>}]} {
    %c0 = arith.constant 0 : index
    %c0_0 = arith.constant 0 : index
    %c0_1 = arith.constant 0 : index
    %0 = vector.load %arg2[%c0, %c0_0, %c0_1] : memref<2x8x512xf32, #tpu.memory_space<vmem>>, vector<2x8x512xf32>
    %c0_2 = arith.constant 0 : index
    %c0_3 = arith.constant 0 : index
    %c0_4 = arith.constant 0 : index
    %c0_5 = arith.constant 0 : index
    %1 = vector.load %arg3[%c0_2, %c0_3, %c0_4, %c0_5] : memref<2x1x2x256xf32, #tpu.memory_space<vmem>>, vector<2x1x2x256xf32>
    %2 = vector.shape_cast %1 : vector<2x1x2x256xf32> to vector<2x2x256xf32>
    %cst = arith.constant dense<0.000000e+00> : vector<2x512xf32>
    %3 = vector.multi_reduction <add>, %0, %cst [1] : vector<2x8x512xf32> to vector<2x512xf32>
    %cst_6 = arith.constant 1.250000e-01 : f32
    %4 = vector.broadcast %cst_6 : f32 to vector<2x512xf32>
    %5 = arith.mulf %3, %4 : vector<2x512xf32>
    %cst_7 = arith.constant dense<0xFF800000> : vector<2x512xf32>
    %6 = vector.multi_reduction <maximumf>, %0, %cst_7 [1] : vector<2x8x512xf32> to vector<2x512xf32>
    %7 = vector.extract_strided_slice %2 {offsets = [0, 0, 0], sizes = [2, 1, 128], strides = [1, 1, 1]} : vector<2x2x256xf32> to vector<2x1x128xf32>
    %8 = vector.shape_cast %7 : vector<2x1x128xf32> to vector<2x128xf32>
    %9 = vector.extract_strided_slice %2 {offsets = [0, 0, 128], sizes = [2, 1, 128], strides = [1, 1, 1]} : vector<2x2x256xf32> to vector<2x1x128xf32>
    %10 = vector.shape_cast %9 : vector<2x1x128xf32> to vector<2x128xf32>
    %11 = tpu.concatenate %8, %5, %10 in 1 : vector<2x128xf32>, vector<2x512xf32>, vector<2x128xf32> -> vector<2x768xf32>
    %12 = vector.extract_strided_slice %2 {offsets = [0, 1, 0], sizes = [2, 1, 128], strides = [1, 1, 1]} : vector<2x2x256xf32> to vector<2x1x128xf32>
    %13 = vector.shape_cast %12 : vector<2x1x128xf32> to vector<2x128xf32>
    %14 = vector.extract_strided_slice %2 {offsets = [0, 1, 128], sizes = [2, 1, 128], strides = [1, 1, 1]} : vector<2x2x256xf32> to vector<2x1x128xf32>
    %15 = vector.shape_cast %14 : vector<2x1x128xf32> to vector<2x128xf32>
    %16 = tpu.concatenate %13, %6, %15 in 1 : vector<2x128xf32>, vector<2x512xf32>, vector<2x128xf32> -> vector<2x768xf32>
    %cst_8 = arith.constant 0.000000e+00 : f32
    %17 = vector.broadcast %cst_8 : f32 to vector<2x512xf32>
    %c0_9 = arith.constant 0 : index
    %c0_10 = arith.constant 0 : index
    %18 = memref.load %arg4[%c0_9, %c0_10] : memref<2x9xf32, #tpu.memory_space<smem>>
    %19 = vector.extract_strided_slice %11 {offsets = [0, 124], sizes = [2, 512], strides = [1, 1]} : vector<2x768xf32> to vector<2x512xf32>
    %20 = vector.broadcast %18 : f32 to vector<2x512xf32>
    %21 = arith.mulf %20, %19 : vector<2x512xf32>
    %22 = arith.addf %17, %21 : vector<2x512xf32>
    %c1 = arith.constant 1 : index
    %c0_11 = arith.constant 0 : index
    %23 = memref.load %arg4[%c1, %c0_11] : memref<2x9xf32, #tpu.memory_space<smem>>
    %24 = vector.extract_strided_slice %16 {offsets = [0, 124], sizes = [2, 512], strides = [1, 1]} : vector<2x768xf32> to vector<2x512xf32>
    %25 = vector.broadcast %23 : f32 to vector<2x512xf32>
    %26 = arith.mulf %25, %24 : vector<2x512xf32>
    %27 = arith.addf %22, %26 : vector<2x512xf32>
    %c0_12 = arith.constant 0 : index
    %c1_13 = arith.constant 1 : index
    %28 = memref.load %arg4[%c0_12, %c1_13] : memref<2x9xf32, #tpu.memory_space<smem>>
    %29 = vector.extract_strided_slice %11 {offsets = [0, 125], sizes = [2, 512], strides = [1, 1]} : vector<2x768xf32> to vector<2x512xf32>
    %30 = vector.broadcast %28 : f32 to vector<2x512xf32>
    %31 = arith.mulf %30, %29 : vector<2x512xf32>
    %32 = arith.addf %27, %31 : vector<2x512xf32>
    %c1_14 = arith.constant 1 : index
    %c1_15 = arith.constant 1 : index
    %33 = memref.load %arg4[%c1_14, %c1_15] : memref<2x9xf32, #tpu.memory_space<smem>>
    %34 = vector.extract_strided_slice %16 {offsets = [0, 125], sizes = [2, 512], strides = [1, 1]} : vector<2x768xf32> to vector<2x512xf32>
    %35 = vector.broadcast %33 : f32 to vector<2x512xf32>
    %36 = arith.mulf %35, %34 : vector<2x512xf32>
    %37 = arith.addf %32, %36 : vector<2x512xf32>
    %c0_16 = arith.constant 0 : index
    %c2 = arith.constant 2 : index
    %38 = memref.load %arg4[%c0_16, %c2] : memref<2x9xf32, #tpu.memory_space<smem>>
    %39 = vector.extract_strided_slice %11 {offsets = [0, 126], sizes = [2, 512], strides = [1, 1]} : vector<2x768xf32> to vector<2x512xf32>
    %40 = vector.broadcast %38 : f32 to vector<2x512xf32>
    %41 = arith.mulf %40, %39 : vector<2x512xf32>
    %42 = arith.addf %37, %41 : vector<2x512xf32>
    %c1_17 = arith.constant 1 : index
    %c2_18 = arith.constant 2 : index
    %43 = memref.load %arg4[%c1_17, %c2_18] : memref<2x9xf32, #tpu.memory_space<smem>>
    %44 = vector.extract_strided_slice %16 {offsets = [0, 126], sizes = [2, 512], strides = [1, 1]} : vector<2x768xf32> to vector<2x512xf32>
    %45 = vector.broadcast %43 : f32 to vector<2x512xf32>
    %46 = arith.mulf %45, %44 : vector<2x512xf32>
    %47 = arith.addf %42, %46 : vector<2x512xf32>
    %c0_19 = arith.constant 0 : index
    %c3 = arith.constant 3 : index
    %48 = memref.load %arg4[%c0_19, %c3] : memref<2x9xf32, #tpu.memory_space<smem>>
    %49 = vector.extract_strided_slice %11 {offsets = [0, 127], sizes = [2, 512], strides = [1, 1]} : vector<2x768xf32> to vector<2x512xf32>
    %50 = vector.broadcast %48 : f32 to vector<2x512xf32>
    %51 = arith.mulf %50, %49 : vector<2x512xf32>
    %52 = arith.addf %47, %51 : vector<2x512xf32>
    %c1_20 = arith.constant 1 : index
    %c3_21 = arith.constant 3 : index
    %53 = memref.load %arg4[%c1_20, %c3_21] : memref<2x9xf32, #tpu.memory_space<smem>>
    %54 = vector.extract_strided_slice %16 {offsets = [0, 127], sizes = [2, 512], strides = [1, 1]} : vector<2x768xf32> to vector<2x512xf32>
    %55 = vector.broadcast %53 : f32 to vector<2x512xf32>
    %56 = arith.mulf %55, %54 : vector<2x512xf32>
    %57 = arith.addf %52, %56 : vector<2x512xf32>
    %c0_22 = arith.constant 0 : index
    %c4 = arith.constant 4 : index
    %58 = memref.load %arg4[%c0_22, %c4] : memref<2x9xf32, #tpu.memory_space<smem>>
    %59 = vector.extract_strided_slice %11 {offsets = [0, 128], sizes = [2, 512], strides = [1, 1]} : vector<2x768xf32> to vector<2x512xf32>
    %60 = vector.broadcast %58 : f32 to vector<2x512xf32>
    %61 = arith.mulf %60, %59 : vector<2x512xf32>
    %62 = arith.addf %57, %61 : vector<2x512xf32>
    %c1_23 = arith.constant 1 : index
    %c4_24 = arith.constant 4 : index
    %63 = memref.load %arg4[%c1_23, %c4_24] : memref<2x9xf32, #tpu.memory_space<smem>>
    %64 = vector.extract_strided_slice %16 {offsets = [0, 128], sizes = [2, 512], strides = [1, 1]} : vector<2x768xf32> to vector<2x512xf32>
    %65 = vector.broadcast %63 : f32 to vector<2x512xf32>
    %66 = arith.mulf %65, %64 : vector<2x512xf32>
    %67 = arith.addf %62, %66 : vector<2x512xf32>
    %c0_25 = arith.constant 0 : index
    %c5 = arith.constant 5 : index
    %68 = memref.load %arg4[%c0_25, %c5] : memref<2x9xf32, #tpu.memory_space<smem>>
    %69 = vector.extract_strided_slice %11 {offsets = [0, 129], sizes = [2, 512], strides = [1, 1]} : vector<2x768xf32> to vector<2x512xf32>
    %70 = vector.broadcast %68 : f32 to vector<2x512xf32>
    %71 = arith.mulf %70, %69 : vector<2x512xf32>
    %72 = arith.addf %67, %71 : vector<2x512xf32>
    %c1_26 = arith.constant 1 : index
    %c5_27 = arith.constant 5 : index
    %73 = memref.load %arg4[%c1_26, %c5_27] : memref<2x9xf32, #tpu.memory_space<smem>>
    %74 = vector.extract_strided_slice %16 {offsets = [0, 129], sizes = [2, 512], strides = [1, 1]} : vector<2x768xf32> to vector<2x512xf32>
    %75 = vector.broadcast %73 : f32 to vector<2x512xf32>
    %76 = arith.mulf %75, %74 : vector<2x512xf32>
    %77 = arith.addf %72, %76 : vector<2x512xf32>
    %c0_28 = arith.constant 0 : index
    %c6 = arith.constant 6 : index
    %78 = memref.load %arg4[%c0_28, %c6] : memref<2x9xf32, #tpu.memory_space<smem>>
    %79 = vector.extract_strided_slice %11 {offsets = [0, 130], sizes = [2, 512], strides = [1, 1]} : vector<2x768xf32> to vector<2x512xf32>
    %80 = vector.broadcast %78 : f32 to vector<2x512xf32>
    %81 = arith.mulf %80, %79 : vector<2x512xf32>
    %82 = arith.addf %77, %81 : vector<2x512xf32>
    %c1_29 = arith.constant 1 : index
    %c6_30 = arith.constant 6 : index
    %83 = memref.load %arg4[%c1_29, %c6_30] : memref<2x9xf32, #tpu.memory_space<smem>>
    %84 = vector.extract_strided_slice %16 {offsets = [0, 130], sizes = [2, 512], strides = [1, 1]} : vector<2x768xf32> to vector<2x512xf32>
    %85 = vector.broadcast %83 : f32 to vector<2x512xf32>
    %86 = arith.mulf %85, %84 : vector<2x512xf32>
    %87 = arith.addf %82, %86 : vector<2x512xf32>
    %c0_31 = arith.constant 0 : index
    %c7 = arith.constant 7 : index
    %88 = memref.load %arg4[%c0_31, %c7] : memref<2x9xf32, #tpu.memory_space<smem>>
    %89 = vector.extract_strided_slice %11 {offsets = [0, 131], sizes = [2, 512], strides = [1, 1]} : vector<2x768xf32> to vector<2x512xf32>
    %90 = vector.broadcast %88 : f32 to vector<2x512xf32>
    %91 = arith.mulf %90, %89 : vector<2x512xf32>
    %92 = arith.addf %87, %91 : vector<2x512xf32>
    %c1_32 = arith.constant 1 : index
    %c7_33 = arith.constant 7 : index
    %93 = memref.load %arg4[%c1_32, %c7_33] : memref<2x9xf32, #tpu.memory_space<smem>>
    %94 = vector.extract_strided_slice %16 {offsets = [0, 131], sizes = [2, 512], strides = [1, 1]} : vector<2x768xf32> to vector<2x512xf32>
    %95 = vector.broadcast %93 : f32 to vector<2x512xf32>
    %96 = arith.mulf %95, %94 : vector<2x512xf32>
    %97 = arith.addf %92, %96 : vector<2x512xf32>
    %c0_34 = arith.constant 0 : index
    %c8 = arith.constant 8 : index
    %98 = memref.load %arg4[%c0_34, %c8] : memref<2x9xf32, #tpu.memory_space<smem>>
    %99 = vector.extract_strided_slice %11 {offsets = [0, 132], sizes = [2, 512], strides = [1, 1]} : vector<2x768xf32> to vector<2x512xf32>
    %100 = vector.broadcast %98 : f32 to vector<2x512xf32>
    %101 = arith.mulf %100, %99 : vector<2x512xf32>
    %102 = arith.addf %97, %101 : vector<2x512xf32>
    %c1_35 = arith.constant 1 : index
    %c8_36 = arith.constant 8 : index
    %103 = memref.load %arg4[%c1_35, %c8_36] : memref<2x9xf32, #tpu.memory_space<smem>>
    %104 = vector.extract_strided_slice %16 {offsets = [0, 132], sizes = [2, 512], strides = [1, 1]} : vector<2x768xf32> to vector<2x512xf32>
    %105 = vector.broadcast %103 : f32 to vector<2x512xf32>
    %106 = arith.mulf %105, %104 : vector<2x512xf32>
    %107 = arith.addf %102, %106 : vector<2x512xf32>
    %cst_37 = arith.constant 0.000000e+00 : f32
    %108 = vector.broadcast %cst_37 : f32 to vector<2x512xf32>
    %109 = arith.subf %108, %107 : vector<2x512xf32>
    %110 = math.exp %109 : vector<2x512xf32>
    %cst_38 = arith.constant 1.000000e+00 : f32
    %111 = vector.broadcast %cst_38 : f32 to vector<2x512xf32>
    %112 = arith.addf %111, %110 : vector<2x512xf32>
    %113 = tpu.reciprocal %112 : vector<2x512xf32> -> vector<2x512xf32>
    %114 = vector.shape_cast %113 : vector<2x512xf32> to vector<2x1x512xf32>
    %c0_39 = arith.constant 0 : index
    %c0_40 = arith.constant 0 : index
    %c0_41 = arith.constant 0 : index
    %115 = vector.load %arg2[%c0_39, %c0_40, %c0_41] : memref<2x8x512xf32, #tpu.memory_space<vmem>>, vector<2x8x512xf32>
    %116 = vector.broadcast %114 : vector<2x1x512xf32> to vector<2x8x512xf32>
    %117 = arith.mulf %116, %115 : vector<2x8x512xf32>
    %c0_42 = arith.constant 0 : index
    %c0_43 = arith.constant 0 : index
    %c0_44 = arith.constant 0 : index
    %118 = vector.load %arg5[%c0_42, %c0_43, %c0_44] : memref<2x8x512xf32, #tpu.memory_space<vmem>>, vector<2x8x512xf32>
    tpu.vector_store %arg5[%c0_42, %c0_43, %c0_44], %117 {strides = array<i32>} : memref<2x8x512xf32, #tpu.memory_space<vmem>>, vector<2x8x512xf32>,
    return
  }
  func.func @transform_0(%arg0: i32, %arg1: i32) -> (i32, i32, i32) {
    %c0_i32 = arith.constant 0 : i32
    %c0_i32_0 = arith.constant 0 : i32
    return %arg0, %c0_i32, %arg1 : i32, i32, i32
  }
  func.func @transform_1(%arg0: i32, %arg1: i32) -> (i32, i32, i32, i32) {
    %c0_i32 = arith.constant 0 : i32
    %c0_i32_0 = arith.constant 0 : i32
    %c0_i32_1 = arith.constant 0 : i32
    return %arg0, %arg1, %c0_i32, %c0_i32_0 : i32, i32, i32, i32
  }
  func.func @transform_2(%arg0: i32, %arg1: i32) -> (i32, i32) {
    %c0_i32 = arith.constant 0 : i32
    %c0_i32_0 = arith.constant 0 : i32
    %c0_i32_1 = arith.constant 0 : i32
    return %c0_i32, %c0_i32_0 : i32, i32
  }
  func.func @transform_3(%arg0: i32, %arg1: i32) -> (i32, i32, i32) {
    %c0_i32 = arith.constant 0 : i32
    %c0_i32_0 = arith.constant 0 : i32
    return %arg0, %c0_i32, %arg1 : i32, i32, i32
  }
}

</mosaic_0001>

<bundles_post_ra>
// kernel: tpu_custom_call.1
= control target key start
LH: loop header
LB: loop body
LE: loop exit
PB: predicated region body
PF: predicated region fallthrough
CT: control target
= control target key end

     0   :  { %8 = vsyncpa [#allocation3], 0  ;;  %s1769_s0 = inlined_call_operand.hbm [shape: f32[2,8,512], index: 0, kind: input, shape index: {}]   ;;  %s1770_s1 = inlined_call_operand.hbm [shape: f32[2,1,2,256], index: 1, kind: input, shape index: {}]   ;;  %s1771_s2 = inlined_call_operand.hbm [shape: f32[2,9], index: 2, kind: input, shape index: {}]   ;;  %s1772_s3 = inlined_call_operand.hbm [shape: f32[2,8,512], index: 3, kind: output, shape index: {}]  }
   0x1   :  { %9 = vsyncpa [#allocation7], 0 }
   0x2   :  { %10 = vsyncpa [#allocation5], 0 }
   0x3   :  { %11 = vsyncpa [#allocation4], 0  ;;  %s16_s14 = sshll.u32 %s1769_s0, 4  ;;  %s1287_s15 = smov [#allocation2]   ;;  %s17_s14 = int_to_ptr.hbm [resolvable:$true] %s16_s14 }
   0x4   :  { %s18_s16 = sshll.u32 %s1287_s15, 4  ;;  %s29_s19 = sshll.u32 %s1770_s1, 4  ;;  %s19_s16 = int_to_ptr.vmem [resolvable:$true] %s18_s16  ;;  %s30_s19 = int_to_ptr.hbm [resolvable:$true] %s29_s19 }
   0x5   :  { %s1288_s20 = smov 512   ;;  %s1289_s21 = smov 32  }
   0x6   :  { %24 = dma.hbm_to_vmem [thread:$0]  %s17_s14, 1024, %s19_s16, [#allocation3], %s1288_s20, %s1288_s20, %s1289_s21  }
   0x7   :  { %s1290_s22 = smov [#allocation6]   ;;  %s1291_s24 = smov 64  }
   0x8   :  { %s31_s23 = sshll.u32 %s1290_s22, 4  ;;  %s1292_s0 = smov 4   ;;  %s32_s23 = int_to_ptr.vmem [resolvable:$true] %s31_s23 }
   0x9   :  { %37 = dma.hbm_to_vmem [thread:$0]  %s30_s19, 128, %s32_s23, [#allocation7], %s1291_s24, %s1291_s24, %s1292_s0  }
   0xa   :  { %s43_s27 = sshll.u32 %s1771_s2, 4  ;;  %s1293_s1 = smov [#allocation8]   ;;  %s44_s27 = int_to_ptr.hbm [resolvable:$true] %s43_s27 }
   0xb   :  { %46 = dma.hbm_to_smem %s44_s27, 32, %s1293_s1, [#allocation5]  }
   0xc   :  { %1279 = dma.done.wait [#allocation3], 1024  }
   0xd   :  { %1280 = vsyncadd [#allocation3], 4294966272 }
   0xe   :  { %1281 = dma.done.wait [#allocation7], 128  }
   0xf   :  { %1282 = vsyncadd [#allocation7], 4294967168 }
  0x10   :  { %1283 = dma.done.wait [#allocation5], 32  }
  0x11   :  { %1284 = vsyncadd [#allocation5], 4294967264 }
  0x12   :  { %59 = sfence }
  0x13   :  { %v1336_v0 = vld [vmem:[#allocation6] sm:$0xf]  ;;  %v1338_v1 = vld [vmem:[#allocation6 + $0x4] sm:$0xf]  ;;  %vm180_vm0 = vcmask 1041409   ;;  %s1142_s2 = sld [smem:[#allocation8 + $0x1]] }
  0x14   :  { %v178_v2 = vperm.slane %v1336_v0, 0  ;;  %v179_v3 = vperm.slane %v1338_v1, 0  ;;  %v1342_v4 = vld [vmem:[#allocation2 + $0x8] sm:$0xff]  ;;  %v1348_v8 = vld [vmem:[#allocation2] sm:$0xff]  ;;  %v1352_v10 = vld [vmem:[#allocation2 + $0x10] sm:$0xff]  ;;  %v203_v19 = vperm.slane %v1336_v0, 1 }
  0x15   :  { %v1344_v5 = vld [vmem:[#allocation2 + $0x28] sm:$0xff]  ;;  %v76_v6 = vrot.slane %v1342_v4, 4  ;;  %v1350_v9 = vld [vmem:[#allocation2 + $0x20] sm:$0xff]  ;;  %v70_v12 = vrot.slane %v1348_v8, 4  ;;  %v1359_v14 = vld [vmem:[#allocation2 + $0x30] sm:$0xff]  ;;  %v82_v15 = vrot.slane %v1352_v10, 4 }
  0x16   :  { %v100_v7 = vrot.slane %v1344_v5, 4  ;;  %v1355_v11 = vsel %vm180_vm0, %v179_v3, %v178_v2  ;;  %v94_v13 = vrot.slane %v1350_v9, 4  ;;  %v106_v18 = vrot.slane %v1359_v14, 4  ;;  %s1384_s28 = sld [smem:[#allocation8 + $0x81]]  ;;  %s1294_s29 = smov 127  }
  0x17   :  { %v77_v16 = vadd.f32 %v76_v6, %v1342_v4  ;;  %v71_v20 = vadd.f32 %v70_v12, %v1348_v8  ;;  %v83_v22 = vadd.f32 %v82_v15, %v1352_v10  ;;  %v127_v23 = vmax.f32 %v1348_v8, %v70_v12  ;;  %s1144_s30 = sld [smem:[#allocation8 + $0x2]]  ;;  %s1295_s5 = smov 126  }
  0x18   :  { %v101_v17 = vadd.f32 %v100_v7, %v1344_v5  ;;  %v95_v21 = vadd.f32 %v94_v13, %v1350_v9  ;;  %v107_v26 = vadd.f32 %v106_v18, %v1359_v14  ;;  %v151_v27 = vmax.f32 %v1350_v9, %v94_v13  ;;  %s1145_s4 = sld [smem:[#allocation8 + $0x82]]  ;;  %s1296_s8 = smov 125  }
  0x19   :  { %v78_v24 = vrot.slane %v77_v16, 2  ;;  %v1380_v28 = vstv %s1142_s2  ;;  %v72_v29 = vrot.slane %v71_v20, 2  ;;  %v84_v31 = vrot.slane %v83_v22, 2  ;;  %s1146_s6 = sld [smem:[#allocation8 + $0x3]]  ;;  %s1297_s11 = smov 124  }
  0x1a   :  { %v102_v25 = vrot.slane %v101_v17, 2  ;;  %v96_v30 = vrot.slane %v95_v21, 2  ;;  %vm205_vm1 = vcmask 1042434   ;;  %v269_v32 = vmul.f32 %v1380_v28, %v1355_v11  ;;  %s1147_s7 = sld [smem:[#allocation8 + $0x83]]  ;;  %s1298_s14 = smov 123  }
  0x1b   :  { %v79_v33 = vadd.f32 %v78_v24, %v77_v16  ;;  %v108_v35 = vrot.slane %v107_v26, 2  ;;  %v73_v36 = vadd.f32 %v72_v29, %v71_v20  ;;  %v85_v38 = vadd.f32 %v84_v31, %v83_v22  ;;  %v1402_v22 = vld [vmem:[#allocation2 + $0x18] sm:$0xff]  ;;  %s1148_s9 = sld [smem:[#allocation8 + $0x4]]  ;;  %s1299_s19 = smov 122  }
  0x1c   :  { %v103_v34 = vadd.f32 %v102_v25, %v101_v17  ;;  %v97_v37 = vadd.f32 %v96_v30, %v95_v21  ;;  %v128_v39 = vrot.slane %v127_v23, 2  ;;  %279 = vrot.lane.b32.xlu0 %v269_v32, %s1294_s29  ;;  %v152_v43 = vrot.slane %v151_v27, 2  ;;  %s1149_s10 = sld [smem:[#allocation8 + $0x84]]  ;;  %s1300_s24 = smov 121  }
  0x1d   :  { %v80_v40 = vrot.slane %v79_v33, 1  ;;  %v109_v42 = vadd.f32 %v108_v35, %v107_v26  ;;  %v74_v44 = vrot.slane %v73_v36, 1  ;;  %v86_v46 = vrot.slane %v85_v38, 1  ;;  %s1150_s12 = sld [smem:[#allocation8 + $0x5]]  ;;  %s1301_s27 = smov 120  }
  0x1e   :  { %v104_v41 = vrot.slane %v103_v34, 1  ;;  %v98_v45 = vrot.slane %v97_v37, 1  ;;  %v129_v47 = vmax.f32 %v127_v23, %v128_v39  ;;  %v153_v51 = vmax.f32 %v151_v27, %v152_v43  ;;  %v1404_v23 = vld [vmem:[#allocation2 + $0x38] sm:$0xff]  ;;  %s1151_s13 = sld [smem:[#allocation8 + $0x85]] }
  0x1f   :  { %v81_v48 = vadd.f32 %v80_v40, %v79_v33  ;;  %v110_v50 = vrot.slane %v109_v42, 1  ;;  %v75_v52 = vadd.f32 %v74_v44, %v73_v36  ;;  %v87_v54 = vadd.f32 %v86_v46, %v85_v38  ;;  %s1141_s15 = sld [smem:[#allocation8 + $0x80]] }
  0x20   :  { %v105_v49 = vadd.f32 %v104_v41, %v103_v34  ;;  %v99_v53 = vadd.f32 %v98_v45, %v97_v37  ;;  %v130_v55 = vrot.slane %v129_v47, 1  ;;  %v154_v59 = vrot.slane %v153_v51, 1  ;;  %s228_s16 = sld [smem:[#allocation8]] }
  0x21   :  { %v119_v56 = vmul.f32 0.125, %v81_v48  ;;  %v111_v58 = vadd.f32 %v110_v50, %v109_v42  ;;  %v118_v60 = vmul.f32 0.125, %v75_v52  ;;  %v120_v62 = vmul.f32 0.125, %v87_v54  ;;  %s1152_s17 = sld [smem:[#allocation8 + $0x6]] }
  0x22   :  { %v123_v57 = vmul.f32 0.125, %v105_v49  ;;  %v122_v61 = vmul.f32 0.125, %v99_v53  ;;  %v131_v63 = vmax.f32 %v129_v47, %v130_v55  ;;  %v155_v12 = vmax.f32 %v153_v51, %v154_v59  ;;  %s1153_s18 = sld [smem:[#allocation8 + $0x86]] }
  0x23   :  { %v124_v3 = vmul.f32 0.125, %v111_v58  ;;  %v1391_v13 = vstv %s1384_s28  ;;  %v204_v20 = vperm.slane %v1338_v1, 1  ;;  %v133_v21 = vmax.f32 %v1342_v4, %v76_v6  ;;  %s1154_s22 = sld [smem:[#allocation8 + $0x7]] }
  0x24   :  { %v1388_v2 = vsel %vm180_vm0, %v123_v57, %v119_v56  ;;  %v1396_v17 = vsel %vm180_vm0, %v122_v61, %v118_v60  ;;  %v1409_v25 = vsel %vm205_vm1, %v155_v12, %v131_v63  ;;  %v157_v26 = vmax.f32 %v1344_v5, %v100_v7  ;;  %s1155_s23 = sld [smem:[#allocation8 + $0x87]] }
  0x25   :  { %v271_v16 = vmul.f32 %v1380_v28, %v1388_v2  ;;  %v270_v24 = vmul.f32 %v1380_v28, %v1396_v17  ;;  %v1416_v27 = vsel %vm180_vm0, %v124_v3, %v120_v62  ;;  %v307_v6 = vmul.f32 %v1391_v13, %v1409_v25  ;;  %s1156_s25 = sld [smem:[#allocation8 + $0x8]] }
  0x26   :  { %v1423_v29 = vsel %vm205_vm1, %v204_v20, %v203_v19  ;;  %v134_v30 = vrot.slane %v133_v21, 2  ;;  %v158_v5 = vrot.slane %v157_v26, 2  ;;  %v88_v7 = vrot.slane %v1402_v22, 4  ;;  %s1157_s26 = sld [smem:[#allocation8 + $0x88]] }
  0x27   :  { %283 = vrot.lane.b32.xlu1 %v271_v16, %s1294_s29  ;;  %281 = vrot.lane.b32.xlu0 %v270_v24, %s1294_s29  ;;  %v306_v31 = vmul.f32 %v1391_v13, %v1423_v29  ;;  %v112_v32 = vrot.slane %v1404_v23, 4  ;;  %v139_v34 = vmax.f32 %v1352_v10, %v82_v15  ;;  %v272_v38 = vmul.f32 %v1380_v28, %v1416_v27 }
  0x28   :  { %v135_v33 = vmax.f32 %v133_v21, %v134_v30  ;;  %v159_v36 = vmax.f32 %v157_v26, %v158_v5  ;;  %v145_v19 = vmax.f32 %v1402_v22, %v88_v7  ;;  %v89_v40 = vadd.f32 %v88_v7, %v1402_v22 }
  0x29   :  { %v316_v35 = vrot.slane %v306_v31, 1  ;;  %v169_v37 = vmax.f32 %v1404_v23, %v112_v32  ;;  %v113_v41 = vadd.f32 %v112_v32, %v1404_v23  ;;  %v317_v42 = vrot.slane %v307_v6, 1 }
  0x2a   :  { %v136_v39 = vrot.slane %v135_v33, 1  ;;  %v160_v43 = vrot.slane %v159_v36, 1  ;;  %v146_v44 = vrot.slane %v145_v19, 2  ;;  %v90_v46 = vrot.slane %v89_v40, 2 }
  0x2b   :  { %321 = vrot.lane.b32.xlu2 %v316_v35, %s1294_s29  ;;  %v170_v15 = vrot.slane %v169_v37, 2  ;;  %v114_v47 = vrot.slane %v113_v41, 2  ;;  %v140_v48 = vrot.slane %v139_v34, 2  ;;  %v163_v52 = vmax.f32 %v1359_v14, %v106_v18 }
  0x2c   :  { %v137_v45 = vmax.f32 %v135_v33, %v136_v39  ;;  %v161_v49 = vmax.f32 %v159_v36, %v160_v43  ;;  %v147_v50 = vmax.f32 %v145_v19, %v146_v44  ;;  %v91_v53 = vadd.f32 %v90_v46, %v89_v40 }
  0x2d   :  { %v171_v51 = vmax.f32 %v169_v37, %v170_v15  ;;  %v115_v54 = vadd.f32 %v114_v47, %v113_v41  ;;  %v141_v55 = vmax.f32 %v139_v34, %v140_v48  ;;  %v164_v59 = vrot.slane %v163_v52, 2 }
  0x2e   :  { %v1446_v56 = vsel %vm205_vm1, %v161_v49, %v137_v45  ;;  %v148_v57 = vrot.slane %v147_v50, 1  ;;  %v92_v61 = vrot.slane %v91_v53, 1  ;;  %v346_v35 = vstv %s1144_s30 }
  0x2f   :  { %285 = vrot.lane.b32.xlu1 %v272_v38, %s1294_s29  ;;  %323 = vrot.lane.b32.xlu0 %v317_v42, %s1294_s29  ;;  %v172_v58 = vrot.slane %v171_v51, 1  ;;  %v308_v60 = vmul.f32 %v1391_v13, %v1446_v56  ;;  %v116_v62 = vrot.slane %v115_v54, 1  ;;  %v142_v18 = vrot.slane %v141_v55, 1 }
  0x30   :  { %v149_v63 = vmax.f32 %v147_v50, %v148_v57  ;;  %v165_v12 = vmax.f32 %v163_v52, %v164_v59  ;;  %v93_v20 = vadd.f32 %v92_v61, %v91_v53  ;;  %v347_v37 = vmul.f32 %v346_v35, %v1355_v11 }
  0x31   :  { %v173_v3 = vmax.f32 %v171_v51, %v172_v58  ;;  %v318_v16 = vrot.slane %v308_v60, 1  ;;  %v117_v21 = vadd.f32 %v116_v62, %v115_v54  ;;  %v143_v26 = vmax.f32 %v141_v55, %v142_v18 }
  0x32   :  { %v166_v6 = vrot.slane %v165_v12, 1  ;;  %v121_v31 = vmul.f32 0.125, %v93_v20  ;;  %v349_v38 = vmul.f32 %v346_v35, %v1388_v2  ;;  %v383_v40 = vstv %s1145_s4 }
  0x33   :  { %v1451_v24 = vsel %vm205_vm1, %v173_v3, %v149_v63  ;;  %v125_v5 = vmul.f32 0.125, %v117_v21  ;;  %v350_v41 = vmul.f32 %v346_v35, %v1416_v27  ;;  %v385_v43 = vmul.f32 %v383_v40, %v1409_v25 }
  0x34   :  { %v310_v30 = vmul.f32 %v1391_v13, %v1451_v24  ;;  %v167_v7 = vmax.f32 %v165_v12, %v166_v6  ;;  %v388_v47 = vmul.f32 %v383_v40, %v1451_v24  ;;  %v424_v48 = vstv %s1146_s6 }
  0x35   :  { %v1457_v33 = vsel %vm180_vm0, %v125_v5, %v121_v31  ;;  %v395_v15 = vrot.slane %v385_v43, 1  ;;  %v386_v49 = vmul.f32 %v383_v40, %v1446_v56  ;;  %v426_v51 = vmul.f32 %v424_v48, %v1396_v17 }
  0x36   :  { %v320_v32 = vrot.slane %v310_v30, 1  ;;  %v273_v34 = vmul.f32 %v1380_v28, %v1457_v33  ;;  %v1462_v36 = vsel %vm205_vm1, %v167_v7, %v143_v26  ;;  %v384_v28 = vmul.f32 %v383_v40, %v1423_v29 }
  0x37   :  { %325 = vrot.lane.b32.xlu1 %v318_v16, %s1294_s29  ;;  %v309_v19 = vmul.f32 %v1391_v13, %v1462_v36  ;;  %v348_v13 = vmul.f32 %v346_v35, %v1396_v17  ;;  %v387_v44 = vmul.f32 %v383_v40, %v1462_v36  ;;  %v351_v46 = vmul.f32 %v346_v35, %v1457_v33 }
  0x38   :  { %329 = vrot.lane.b32.xlu0 %v320_v32, %s1294_s29  ;;  %287 = vrot.lane.b32.xlu2 %v273_v34, %s1294_s29  ;;  %v394_v42 = vrot.slane %v384_v28, 1  ;;  %v398_v50 = vrot.slane %v388_v47, 1  ;;  %v396_v52 = vrot.slane %v386_v49, 1  ;;  %v427_v53 = vmul.f32 %v424_v48, %v1388_v2 }
  0x39   :  { %v319_v39 = vrot.slane %v309_v19, 1  ;;  %v397_v45 = vrot.slane %v387_v44, 1  ;;  %v461_v54 = vstv %s1147_s7  ;;  %v429_v55 = vmul.f32 %v424_v48, %v1457_v33 }
  0x3a   :  { %v425_v57 = vmul.f32 %v424_v48, %v1355_v11  ;;  %v462_v58 = vmul.f32 %v461_v54, %v1423_v29  ;;  %v464_v59 = vmul.f32 %v461_v54, %v1446_v56  ;;  %v428_v62 = vmul.f32 %v424_v48, %v1416_v27 }
  0x3b   :  { %v465_v18 = vmul.f32 %v461_v54, %v1462_v36  ;;  %v502_v63 = vstv %s1148_s9  ;;  %v463_v3 = vmul.f32 %v461_v54, %v1409_v25  ;;  %v466_v21 = vmul.f32 %v461_v54, %v1451_v24 }
  0x3c   :  { %v472_v60 = vrot.slane %v462_v58, 1  ;;  %v474_v61 = vrot.slane %v464_v59, 1  ;;  %v503_v16 = vmul.f32 %v502_v63, %v1396_v17  ;;  %v504_v26 = vmul.f32 %v502_v63, %v1388_v2 }
  0x3d   :  { %v475_v12 = vrot.slane %v465_v18, 1  ;;  %v473_v20 = vrot.slane %v463_v3, 1  ;;  %v534_v6 = vstv %s1149_s10  ;;  %v506_v30 = vmul.f32 %v502_v63, %v1457_v33 }
  0x3e   :  { %v476_v31 = vrot.slane %v466_v21, 1  ;;  %v535_v5 = vmul.f32 %v534_v6, %v1409_v25  ;;  %v537_v7 = vmul.f32 %v534_v6, %v1462_v36  ;;  %v505_v35 = vmul.f32 %v502_v63, %v1416_v27 }
  0x3f   :  { %357 = vrot.lane.b32.xlu1 %v347_v37, %s1295_s5  ;;  %v538_v19 = vmul.f32 %v534_v6, %v1451_v24  ;;  %v569_v37 = vstv %s1150_s12  ;;  %v177_v40 = vrot.slane %v1338_v1, 2  ;;  %v229_v54 = vstv %s228_s16 }
  0x40   :  { %361 = vrot.lane.b32.xlu0 %v349_v38, %s1295_s5  ;;  %327 = vrot.lane.b32.xlu2 %v319_v39, %s1294_s29  ;;  %v543_v32 = vrot.slane %v535_v5, 1  ;;  %v545_v34 = vrot.slane %v537_v7, 1  ;;  %v536_v38 = vmul.f32 %v534_v6, %v1446_v56  ;;  %v176_v39 = vrot.slane %v1336_v0, 2  ;;  %s1126_s29 = sshll.u32 %s1772_s3, 4  ;;  %s1127_s29 = int_to_ptr.hbm [resolvable:$true] %s1126_s29 }
  0x41   :  { %v546_v28 = vrot.slane %v538_v19, 1  ;;  %v200_v43 = vperm.slane %v177_v40, 0  ;;  %v572_v1 = vmul.f32 %v569_v37, %v1416_v27  ;;  %vm289_vm2 = vcmask 1039360  }
  0x42   :  { %v1551_v63 = vstv %s1152_s17  ;;  %vm367_vm3 = vcmask 1031168   ;;  %vm445_vm4 = vcmask 1022976   ;;  %vm519_vm5 = vcmask 1014784  }
  0x43   :  { %v648_v6 = vmul.f32 %v1551_v63, %v1396_v17  ;;  %vm590_vm6 = vcmask 1006592   ;;  %vm668_vm7 = vcmask 998400   ;;  %vm746_vm8 = vcmask 990208  }
  0x44   :  { %vm824_vm9 = vcmask 982016  }
  0x47   :  { %363 = vrot.lane.b32.xlu1 %v350_v41, %s1295_s5  ;;  %v571_v41 = vmul.f32 %v569_v37, %v1388_v2 }
  0x48   :  { %399 = vrot.lane.b32.xlu0 %v394_v42, %s1295_s5  ;;  %359 = vrot.lane.b32.xlu2 %v348_v13, %s1295_s5  ;;  %v544_v42 = vrot.slane %v536_v38, 1  ;;  %v199_v13 = vperm.slane %v176_v39, 0 }
  0x4a   :  { %v1532_v0 = vsel %vm180_vm0, %v200_v43, %v199_v13 }
  0x4f   :  { %401 = vrot.lane.b32.xlu1 %v395_v15, %s1295_s5  ;;  %v606_v15 = vstv %s1151_s13 }
  0x50   :  { %405 = vrot.lane.b32.xlu0 %v397_v45, %s1295_s5  ;;  %365 = vrot.lane.b32.xlu2 %v351_v46, %s1295_s5  ;;  %v574_v45 = vmul.f32 %v569_v37, %v1532_v0  ;;  %v570_v46 = vmul.f32 %v569_v37, %v1396_v17  ;;  %v607_v47 = vmul.f32 %v606_v15, %v1409_v25 }
  0x51   :  { %v609_v49 = vmul.f32 %v606_v15, %v1462_v36  ;;  %v610_v58 = vmul.f32 %v606_v15, %v1451_v24  ;;  %v608_v3 = vmul.f32 %v606_v15, %v1446_v56 }
  0x53   :  { %v620_v18 = vrot.slane %v610_v58, 1  ;;  %v618_v5 = vrot.slane %v608_v3, 1  ;;  %v684_v58 = vstv %s1153_s18 }
  0x57   :  { %407 = vrot.lane.b32.xlu1 %v398_v50, %s1295_s5  ;;  %v241_v50 = vstv %s1141_s15 }
  0x58   :  { %437 = vrot.lane.b32.xlu0 %v426_v51, %s1296_s8  ;;  %403 = vrot.lane.b32.xlu2 %v396_v52, %s1295_s5  ;;  %v617_v51 = vrot.slane %v607_v47, 1  ;;  %v246_v21 = vmul.f32 %v241_v50, %v1451_v24  ;;  %v245_v7 = vmul.f32 %v241_v50, %v1462_v36  ;;  %v649_v47 = vmul.f32 %v1551_v63, %v1388_v2 }
  0x5f   :  { %439 = vrot.lane.b32.xlu1 %v427_v53, %s1296_s8  ;;  %v619_v53 = vrot.slane %v609_v49, 1 }
  0x60   :  { %443 = vrot.lane.b32.xlu0 %v429_v55, %s1296_s8  ;;  %435 = vrot.lane.b32.xlu2 %v425_v57, %s1296_s8  ;;  %v573_v55 = vmul.f32 %v569_v37, %v1457_v33  ;;  %v242_v57 = vmul.f32 %v241_v50, %v1423_v29  ;;  %v231_v37 = vmul.f32 %v229_v54, %v1396_v17 }
  0x67   :  { %477 = vrot.lane.b32.xlu1 %v472_v60, %s1296_s8  ;;  %v230_v60 = vmul.f32 %v229_v54, %v1355_v11  ;;  %v243_v11 = vmul.f32 %v241_v50, %v1409_v25 }
  0x68   :  { %481 = vrot.lane.b32.xlu0 %v474_v61, %s1296_s8  ;;  %441 = vrot.lane.b32.xlu2 %v428_v62, %s1296_s8  ;;  %v252_v61 = vrot.slane %v242_v57, 1 }
  0x69   :  { %v253_v19 = vrot.slane %v243_v11, 1 }
  0x6f   :  { %483 = vrot.lane.b32.xlu1 %v475_v12, %s1296_s8 }
  0x70   :  { %511 = vrot.lane.b32.xlu0 %v503_v16, %s1297_s11  ;;  %479 = vrot.lane.b32.xlu2 %v473_v20, %s1296_s8  ;;  %v224_v16 = vperm.slane %v176_v39, 1  ;;  %v225_v20 = vperm.slane %v177_v40, 1  ;;  %v232_v40 = vmul.f32 %v229_v54, %v1388_v2 }
  0x77   :  { %513 = vrot.lane.b32.xlu1 %v504_v26, %s1297_s11 }
  0x78   :  { %517 = vrot.lane.b32.xlu0 %v506_v30, %s1297_s11  ;;  %485 = vrot.lane.b32.xlu2 %v476_v31, %s1296_s8  ;;  %v244_v30 = vmul.f32 %v241_v50, %v1446_v56  ;;  %v262_v31 = vadd.f32 %v252_v61, %v230_v60  ;;  %v263_v50 = vadd.f32 %v253_v19, %v231_v37 }
  0x79   :  { %v686_v60 = vmul.f32 %v684_v58, %v1446_v56  ;;  %v685_v19 = vmul.f32 %v684_v58, %v1409_v25 }
  0x7a   :  { %v254_v38 = vrot.slane %v244_v30, 1 }
  0x7f   :  { %547 = vrot.lane.b32.xlu1 %v543_v32, %s1297_s11  ;;  %v1564_v32 = vsel %vm205_vm1, %v225_v20, %v224_v16 }
  0x80   :  { %551 = vrot.lane.b32.xlu0 %v545_v34, %s1297_s11  ;;  %515 = vrot.lane.b32.xlu2 %v505_v35, %s1297_s11  ;;  %v256_v34 = vrot.slane %v246_v21, 1  ;;  %v234_v35 = vmul.f32 %v229_v54, %v1457_v33  ;;  %v611_v43 = vmul.f32 %v606_v15, %v1564_v32 }
  0x82   :  { %v621_v57 = vrot.slane %v611_v43, 1 }
  0x85   :  { %v1529_v44 = vpop.permute.xlu2 %321 }
  0x87   :  { %553 = vrot.lane.b32.xlu1 %v546_v28, %s1297_s11 }
  0x88   :  { %582 = vrot.lane.b32.xlu0 %v571_v41, %s1298_s14  ;;  %549 = vrot.lane.b32.xlu2 %v544_v42, %s1297_s11 }
  0x8e   :  { %v280_v48 = vpop.permute.xlu0 %279 }
  0x8f   :  { %584 = vrot.lane.b32.xlu1 %v572_v1, %s1298_s14  ;;  %v233_v1 = vmul.f32 %v229_v54, %v1416_v27 }
  0x90   :  { %588 = vrot.lane.b32.xlu0 %v574_v45, %s1298_s14  ;;  %580 = vrot.lane.b32.xlu2 %v570_v46, %s1298_s14  ;;  %v255_v45 = vrot.slane %v245_v7, 1  ;;  %v687_v7 = vmul.f32 %v684_v58, %v1462_v36 }
  0x92   :  { %v1542_v52 = vpop.permute.xlu2 %287  ;;  %v265_v15 = vadd.f32 %v255_v45, %v233_v1 }
  0x97   :  { %622 = vrot.lane.b32.xlu1 %v617_v51, %s1298_s14  ;;  %v264_v51 = vadd.f32 %v254_v38, %v232_v40 }
  0x98   :  { %626 = vrot.lane.b32.xlu0 %v619_v53, %s1298_s14  ;;  %586 = vrot.lane.b32.xlu2 %v573_v55, %s1298_s14  ;;  %v651_v53 = vmul.f32 %v1551_v63, %v1457_v33  ;;  %v266_v55 = vadd.f32 %v256_v34, %v234_v35  ;;  %v689_v35 = vmul.f32 %v684_v58, %v1564_v32 }
  0x99   :  { %v284_v59 = vpop.permute.xlu1 %283  ;;  %v282_v62 = vpop.permute.xlu0 %281 }
  0x9a   :  { %v290_v29 = vsel %vm289_vm2, %v280_v48, %v282_v62  ;;  %v291_v12 = vsel %vm289_vm2, %v282_v62, %v284_v59  ;;  %v328_v26 = vpop.permute.xlu2 %327  ;;  %v303_v61 = vadd.f32 %v1542_v52, %v266_v55 }
  0x9b   :  { %v299_v28 = vadd.f32 %v290_v29, %v262_v31  ;;  %v300_v54 = vadd.f32 %v291_v12, %v263_v50  ;;  %v652_v12 = vmul.f32 %v1551_v63, %v1532_v0  ;;  %v696_v31 = vrot.slane %v686_v60, 1 }
  0x9f   :  { %628 = vrot.lane.b32.xlu1 %v620_v18, %s1298_s14 }
  0xa0   :  { %658 = vrot.lane.b32.xlu0 %v648_v6, %s1299_s19  ;;  %624 = vrot.lane.b32.xlu2 %v618_v5, %s1298_s14  ;;  %v650_v5 = vmul.f32 %v1551_v63, %v1416_v27  ;;  %v697_v63 = vrot.slane %v687_v7, 1 }
  0xa1   :  { %v286_v39 = vpop.permute.xlu1 %285  ;;  %v324_v13 = vpop.permute.xlu0 %323 }
  0xa2   :  { %v292_v41 = vsel %vm289_vm2, %v284_v59, %v286_v39  ;;  %v293_v42 = vsel %vm289_vm2, %v286_v39, %v1542_v52  ;;  %v331_v46 = vsel %vm289_vm2, %v1529_v44, %v324_v13  ;;  %v360_v49 = vpop.permute.xlu2 %359 }
  0xa3   :  { %v340_v48 = vadd.f32 %v331_v46, %v299_v28  ;;  %v301_v59 = vadd.f32 %v292_v41, %v264_v51  ;;  %v302_v3 = vadd.f32 %v293_v42, %v265_v15  ;;  %v699_v41 = vrot.slane %v689_v35, 1 }
  0xa4   :  { %v695_v42 = vrot.slane %v685_v19, 1  ;;  %v688_v46 = vmul.f32 %v684_v58, %v1451_v24 }
  0xa6   :  { %v698_v55 = vrot.slane %v688_v46, 1 }
  0xa7   :  { %660 = vrot.lane.b32.xlu1 %v649_v47, %s1299_s19 }
  0xa8   :  { %664 = vrot.lane.b32.xlu0 %v651_v53, %s1299_s19  ;;  %630 = vrot.lane.b32.xlu2 %v621_v57, %s1298_s14  ;;  %v762_v57 = vstv %s1155_s23 }
  0xa9   :  { %v326_v44 = vpop.permute.xlu1 %325 }
  0xaa   :  { %v332_v62 = vsel %vm289_vm2, %v324_v13, %v326_v44  ;;  %v333_v18 = vsel %vm289_vm2, %v326_v44, %v328_v26  ;;  %v330_v20 = vpop.permute.xlu0 %329  ;;  %v366_v6 = vpop.permute.xlu2 %365  ;;  %v725_v13 = vstv %s1154_s22 }
  0xab   :  { %v341_v29 = vadd.f32 %v332_v62, %v300_v54  ;;  %v342_v16 = vadd.f32 %v333_v18, %v301_v59  ;;  %v334_v21 = vsel %vm289_vm2, %v328_v26, %v330_v20  ;;  %v344_v11 = vadd.f32 %v330_v20, %v303_v61 }
  0xac   :  { %v343_v30 = vadd.f32 %v334_v21, %v302_v3  ;;  %v726_v50 = vmul.f32 %v725_v13, %v1396_v17  ;;  %v728_v53 = vmul.f32 %v725_v13, %v1416_v27  ;;  %v763_v54 = vmul.f32 %v762_v57, %v1409_v25 }
  0xad   :  { %v381_v52 = vadd.f32 %v366_v6, %v344_v11  ;;  %v729_v62 = vmul.f32 %v725_v13, %v1457_v33  ;;  %v727_v20 = vmul.f32 %v725_v13, %v1388_v2  ;;  %v766_v11 = vmul.f32 %v762_v57, %v1451_v24 }
  0xaf   :  { %666 = vrot.lane.b32.xlu1 %v652_v12, %s1299_s19  ;;  %v764_v12 = vmul.f32 %v762_v57, %v1446_v56  ;;  %v776_v19 = vrot.slane %v766_v11, 1 }
  0xb0   :  { %702 = vrot.lane.b32.xlu0 %v696_v31, %s1299_s19  ;;  %662 = vrot.lane.b32.xlu2 %v650_v5, %s1299_s19 }
  0xb1   :  { %v358_v34 = vpop.permute.xlu1 %357  ;;  %v774_v7 = vrot.slane %v764_v12, 1 }
  0xb2   :  { %v368_v26 = vsel %vm367_vm3, %v358_v34, %v360_v49  ;;  %v362_v38 = vpop.permute.xlu0 %361  ;;  %v404_v40 = vpop.permute.xlu2 %403 }
  0xb3   :  { %v377_v37 = vadd.f32 %v368_v26, %v340_v48  ;;  %v369_v39 = vsel %vm367_vm3, %v360_v49, %v362_v38 }
  0xb4   :  { %v378_v28 = vadd.f32 %v369_v39, %v341_v29 }
  0xb7   :  { %704 = vrot.lane.b32.xlu1 %v697_v63, %s1299_s19 }
  0xb8   :  { %708 = vrot.lane.b32.xlu0 %v699_v41, %s1299_s19  ;;  %700 = vrot.lane.b32.xlu2 %v695_v42, %s1299_s19 }
  0xb9   :  { %v364_v43 = vpop.permute.xlu1 %363 }
  0xba   :  { %v370_v1 = vsel %vm367_vm3, %v362_v38, %v364_v43  ;;  %v371_v45 = vsel %vm367_vm3, %v364_v43, %v366_v6  ;;  %v400_v49 = vpop.permute.xlu0 %399  ;;  %v436_v51 = vpop.permute.xlu2 %435  ;;  %v767_v38 = vmul.f32 %v762_v57, %v1564_v32 }
  0xbb   :  { %v379_v47 = vadd.f32 %v370_v1, %v342_v16  ;;  %v380_v48 = vadd.f32 %v371_v45, %v343_v30  ;;  %v773_v16 = vrot.slane %v763_v54, 1 }
  0xbf   :  { %736 = vrot.lane.b32.xlu1 %v726_v50, %s1300_s24 }
  0xc0   :  { %740 = vrot.lane.b32.xlu0 %v728_v53, %s1300_s24  ;;  %706 = vrot.lane.b32.xlu2 %v698_v55, %s1299_s19 }
  0xc1   :  { %v402_v15 = vpop.permute.xlu1 %401 }
  0xc2   :  { %v409_v58 = vsel %vm367_vm3, %v400_v49, %v402_v15  ;;  %v410_v59 = vsel %vm367_vm3, %v402_v15, %v404_v40  ;;  %v406_v61 = vpop.permute.xlu0 %405  ;;  %v442_v3 = vpop.permute.xlu2 %441 }
  0xc3   :  { %v418_v44 = vadd.f32 %v409_v58, %v377_v37  ;;  %v419_v60 = vadd.f32 %v410_v59, %v378_v28  ;;  %v411_v18 = vsel %vm367_vm3, %v404_v40, %v406_v61  ;;  %v730_v37 = vmul.f32 %v725_v13, %v1532_v0 }
  0xc4   :  { %v420_v29 = vadd.f32 %v411_v18, %v379_v47  ;;  %v803_v40 = vstv %s1156_s25  ;;  %v765_v28 = vmul.f32 %v762_v57, %v1462_v36  ;;  %v777_v13 = vrot.slane %v767_v38, 1 }
  0xc5   :  { %v806_v15 = vmul.f32 %v803_v40, %v1416_v27 }
  0xc6   :  { %v775_v50 = vrot.slane %v765_v28, 1 }
  0xc7   :  { %742 = vrot.lane.b32.xlu1 %v729_v62, %s1300_s24 }
  0xc8   :  { %778 = vrot.lane.b32.xlu0 %v773_v16, %s1300_s24  ;;  %738 = vrot.lane.b32.xlu2 %v727_v20, %s1300_s24 }
  0xc9   :  { %v408_v21 = vpop.permute.xlu1 %407 }
  0xca   :  { %v412_v6 = vsel %vm367_vm3, %v406_v61, %v408_v21  ;;  %v422_v30 = vadd.f32 %v408_v21, %v381_v52  ;;  %v438_v5 = vpop.permute.xlu0 %437  ;;  %v480_v35 = vpop.permute.xlu2 %479  ;;  %vm979_vm3 = vcmask 1040384  }
  0xcb   :  { %v421_v31 = vadd.f32 %v412_v6, %v380_v48  ;;  %v446_v34 = vsel %vm445_vm4, %v436_v51, %v438_v5  ;;  %v805_v48 = vmul.f32 %v803_v40, %v1388_v2  ;;  %v840_v2 = vstv %s1157_s26 }
  0xcc   :  { %v455_v26 = vadd.f32 %v446_v34, %v418_v44  ;;  %v808_v44 = vmul.f32 %v803_v40, %v1532_v0  ;;  %v841_v61 = vmul.f32 %v840_v2, %v1409_v25  ;;  %v843_v18 = vmul.f32 %v840_v2, %v1462_v36 }
  0xcd   :  { %v807_v25 = vmul.f32 %v803_v40, %v1457_v33  ;;  %v844_v36 = vmul.f32 %v840_v2, %v1451_v24 }
  0xce   :  { %v851_v20 = vrot.slane %v841_v61, 1  ;;  %v853_v21 = vrot.slane %v843_v18, 1 }
  0xcf   :  { %780 = vrot.lane.b32.xlu1 %v774_v7, %s1300_s24  ;;  %v854_v33 = vrot.slane %v844_v36, 1 }
  0xd0   :  { %784 = vrot.lane.b32.xlu0 %v776_v19, %s1300_s24  ;;  %744 = vrot.lane.b32.xlu2 %v730_v37, %s1300_s24 }
  0xd1   :  { %v440_v52 = vpop.permute.xlu1 %439 }
  0xd2   :  { %v447_v63 = vsel %vm445_vm4, %v438_v5, %v440_v52  ;;  %v448_v39 = vsel %vm445_vm4, %v440_v52, %v442_v3  ;;  %v444_v43 = vpop.permute.xlu0 %443  ;;  %v486_v46 = vpop.permute.xlu2 %485 }
  0xd3   :  { %v456_v41 = vadd.f32 %v447_v63, %v419_v60  ;;  %v457_v42 = vadd.f32 %v448_v39, %v420_v29  ;;  %v449_v1 = vsel %vm445_vm4, %v442_v3, %v444_v43  ;;  %v459_v45 = vadd.f32 %v444_v43, %v422_v30 }
  0xd4   :  { %v458_v47 = vadd.f32 %v449_v1, %v421_v31  ;;  %v804_v60 = vmul.f32 %v803_v40, %v1396_v17  ;;  %v842_v31 = vmul.f32 %v840_v2, %v1446_v56  ;;  %v845_v56 = vmul.f32 %v840_v2, %v1564_v32  ;;  %v1194_v2 = vld [vmem:[#allocation2 + $0x28] sm:$0xff] }
  0xd5   :  { %v500_v49 = vadd.f32 %v486_v46, %v459_v45 }
  0xd6   :  { %v852_v37 = vrot.slane %v842_v31, 1 }
  0xd7   :  { %786 = vrot.lane.b32.xlu1 %v777_v13, %s1300_s24  ;;  %v855_v13 = vrot.slane %v845_v56, 1 }
  0xd8   :  { %816 = vrot.lane.b32.xlu0 %v805_v48, %s1301_s27  ;;  %782 = vrot.lane.b32.xlu2 %v775_v50, %s1300_s24 }
  0xd9   :  { %v478_v51 = vpop.permute.xlu1 %477 }
  0xda   :  { %v487_v53 = vsel %vm445_vm4, %v478_v51, %v480_v35  ;;  %v482_v57 = vpop.permute.xlu0 %481  ;;  %v516_v58 = vpop.permute.xlu2 %515 }
  0xdb   :  { %v496_v55 = vadd.f32 %v487_v53, %v455_v26  ;;  %v488_v54 = vsel %vm445_vm4, %v480_v35, %v482_v57 }
  0xdc   :  { %v497_v59 = vadd.f32 %v488_v54, %v456_v41 }
  0xdf   :  { %818 = vrot.lane.b32.xlu1 %v806_v15, %s1301_s27 }
  0xe0   :  { %822 = vrot.lane.b32.xlu0 %v808_v44, %s1301_s27  ;;  %814 = vrot.lane.b32.xlu2 %v804_v60, %s1301_s27 }
  0xe1   :  { %v484_v62 = vpop.permute.xlu1 %483 }
  0xe2   :  { %v489_v27 = vsel %vm445_vm4, %v482_v57, %v484_v62  ;;  %v490_v3 = vsel %vm445_vm4, %v484_v62, %v486_v46  ;;  %v512_v0 = vpop.permute.xlu0 %511  ;;  %v550_v12 = vpop.permute.xlu2 %549  ;;  %vm981_vm4 = vcmask 1041408  }
  0xe3   :  { %v498_v29 = vadd.f32 %v489_v27, %v457_v42  ;;  %v499_v16 = vadd.f32 %v490_v3, %v458_v47  ;;  %v528_v17 = vadd.f32 %v512_v0, %v496_v55 }
  0xe7   :  { %856 = vrot.lane.b32.xlu1 %v851_v20, %s1301_s27 }
  0xe8   :  { %860 = vrot.lane.b32.xlu0 %v853_v21, %s1301_s27  ;;  %820 = vrot.lane.b32.xlu2 %v807_v25, %s1301_s27 }
  0xe9   :  { %v514_v11 = vpop.permute.xlu1 %513 }
  0xea   :  { %v520_v6 = vsel %vm519_vm5, %v512_v0, %v514_v11  ;;  %v521_v30 = vsel %vm519_vm5, %v514_v11, %v516_v58  ;;  %v518_v34 = vpop.permute.xlu0 %517  ;;  %v581_v19 = vpop.permute.xlu2 %580 }
  0xeb   :  { %v529_v5 = vadd.f32 %v520_v6, %v497_v59  ;;  %v530_v7 = vadd.f32 %v521_v30, %v498_v29  ;;  %v522_v35 = vsel %vm519_vm5, %v516_v58, %v518_v34  ;;  %v532_v26 = vadd.f32 %v518_v34, %v500_v49 }
  0xec   :  { %v531_v24 = vadd.f32 %v522_v35, %v499_v16 }
  0xef   :  { %862 = vrot.lane.b32.xlu1 %v854_v33, %s1301_s27 }
  0xf0   :  { %1023 = vrot.lane.b32.xlu0 %v1348_v8, %s1297_s11  ;;  %858 = vrot.lane.b32.xlu2 %v852_v37, %s1301_s27 }
  0xf1   :  { %v548_v38 = vpop.permute.xlu1 %547 }
  0xf2   :  { %v555_v52 = vsel %vm519_vm5, %v548_v38, %v550_v12  ;;  %v563_v63 = vadd.f32 %v548_v38, %v528_v17  ;;  %v552_v40 = vpop.permute.xlu0 %551  ;;  %v587_v41 = vpop.permute.xlu2 %586 }
  0xf3   :  { %v564_v39 = vadd.f32 %v555_v52, %v529_v5  ;;  %v556_v28 = vsel %vm519_vm5, %v550_v12, %v552_v40 }
  0xf4   :  { %v600_v42 = vadd.f32 %v581_v19, %v563_v63  ;;  %v565_v43 = vadd.f32 %v556_v28, %v530_v7 }
  0xf7   :  { %1025 = vrot.lane.b32.xlu1 %v1342_v4, %s1297_s11 }
  0xf8   :  { %1029 = vrot.lane.b32.xlu0 %v1402_v22, %s1297_s11  ;;  %864 = vrot.lane.b32.xlu2 %v855_v13, %s1301_s27 }
  0xf9   :  { %v554_v1 = vpop.permute.xlu1 %553 }
  0xfa   :  { %v557_v8 = vsel %vm519_vm5, %v552_v40, %v554_v1  ;;  %v567_v45 = vadd.f32 %v554_v1, %v532_v26  ;;  %v583_v46 = vpop.permute.xlu0 %582  ;;  %v625_v48 = vpop.permute.xlu2 %624 }
  0xfb   :  { %v566_v32 = vadd.f32 %v557_v8, %v531_v24  ;;  %v591_v47 = vsel %vm590_vm6, %v581_v19, %v583_v46 }
  0xfc   :  { %v601_v49 = vadd.f32 %v591_v47, %v564_v39 }
  0xff   :  { %1031 = vrot.lane.b32.xlu1 %v1350_v9, %s1297_s11 }
 0x100   :  { %1035 = vrot.lane.b32.xlu0 %v1359_v14, %s1297_s11  ;;  %1027 = vrot.lane.b32.xlu2 %v1352_v10, %s1297_s11 }
 0x101   :  { %v585_v4 = vpop.permute.xlu1 %584 }
 0x102   :  { %v592_v22 = vsel %vm590_vm6, %v583_v46, %v585_v4  ;;  %v593_v50 = vsel %vm590_vm6, %v585_v4, %v587_v41  ;;  %v589_v55 = vpop.permute.xlu0 %588  ;;  %v631_v15 = vpop.permute.xlu2 %630 }
 0x103   :  { %v602_v51 = vadd.f32 %v592_v22, %v565_v43  ;;  %v603_v53 = vadd.f32 %v593_v50, %v566_v32  ;;  %v594_v57 = vsel %vm590_vm6, %v587_v41, %v589_v55 }
 0x104   :  { %v604_v54 = vadd.f32 %v594_v57, %v567_v45 }
 0x107   :  { %1037 = vrot.lane.b32.xlu1 %v1404_v23, %s1297_s11 }
 0x108   :  { %1033 = vrot.lane.b32.xlu2 %v1194_v2, %s1297_s11 }
 0x109   :  { %v623_v9 = vpop.permute.xlu1 %622 }
 0x10a   :  { %v632_v14 = vsel %vm590_vm6, %v623_v9, %v625_v48  ;;  %v641_v58 = vadd.f32 %v623_v9, %v600_v42  ;;  %v627_v44 = vpop.permute.xlu0 %626  ;;  %v663_v60 = vpop.permute.xlu2 %662 }
 0x10b   :  { %v642_v59 = vadd.f32 %v632_v14, %v601_v49  ;;  %v633_v10 = vsel %vm590_vm6, %v625_v48, %v627_v44 }
 0x10c   :  { %v643_v61 = vadd.f32 %v633_v10, %v602_v51 }
 0x111   :  { %v629_v62 = vpop.permute.xlu1 %628 }
 0x112   :  { %v634_v18 = vsel %vm590_vm6, %v627_v44, %v629_v62  ;;  %v635_v27 = vsel %vm590_vm6, %v629_v62, %v631_v15  ;;  %v659_v29 = vpop.permute.xlu0 %658  ;;  %v701_v0 = vpop.permute.xlu2 %700 }
 0x113   :  { %v644_v3 = vadd.f32 %v634_v18, %v603_v53  ;;  %v645_v23 = vadd.f32 %v635_v27, %v604_v54  ;;  %v678_v16 = vadd.f32 %v659_v29, %v641_v58 }
 0x115   :  { %v719_v63 = vadd.f32 %v701_v0, %v678_v16 }
 0x119   :  { %v661_v20 = vpop.permute.xlu1 %660 }
 0x11a   :  { %v665_v17 = vpop.permute.xlu0 %664  ;;  %v707_v12 = vpop.permute.xlu2 %706  ;;  %v669_v52 = vsel %vm668_vm7, %v659_v29, %v661_v20  ;;  %v670_v56 = vsel %vm668_vm7, %v661_v20, %v663_v60 }
 0x11b   :  { %v679_v40 = vadd.f32 %v669_v52, %v642_v59  ;;  %v680_v13 = vadd.f32 %v670_v56, %v643_v61  ;;  %v671_v4 = vsel %vm668_vm7, %v663_v60, %v665_v17 }
 0x11c   :  { %v681_v14 = vadd.f32 %v671_v4, %v644_v3 }
 0x121   :  { %v667_v21 = vpop.permute.xlu1 %666 }
 0x122   :  { %v703_v25 = vpop.permute.xlu0 %702  ;;  %v739_v36 = vpop.permute.xlu2 %738  ;;  %v672_v22 = vsel %vm668_vm7, %v665_v17, %v667_v21 }
 0x123   :  { %v710_v39 = vsel %vm668_vm7, %v701_v0, %v703_v25  ;;  %v682_v58 = vadd.f32 %v672_v22, %v645_v23 }
 0x124   :  { %v720_v1 = vadd.f32 %v710_v39, %v679_v40 }
 0x129   :  { %v705_v11 = vpop.permute.xlu1 %704 }
 0x12a   :  { %v709_v6 = vpop.permute.xlu0 %708  ;;  %v745_v30 = vpop.permute.xlu2 %744  ;;  %v711_v41 = vsel %vm668_vm7, %v703_v25, %v705_v11  ;;  %v712_v57 = vsel %vm668_vm7, %v705_v11, %v707_v12 }
 0x12b   :  { %v721_v47 = vadd.f32 %v711_v41, %v680_v13  ;;  %v713_v15 = vsel %vm668_vm7, %v707_v12, %v709_v6  ;;  %v722_v18 = vadd.f32 %v712_v57, %v681_v14 }
 0x12c   :  { %v723_v27 = vadd.f32 %v713_v15, %v682_v58 }
 0x131   :  { %v737_v31 = vpop.permute.xlu1 %736 }
 0x132   :  { %v741_v5 = vpop.permute.xlu0 %740  ;;  %v783_v7 = vpop.permute.xlu2 %782  ;;  %v747_v42 = vsel %vm746_vm8, %v737_v31, %v739_v36  ;;  %v756_v43 = vadd.f32 %v737_v31, %v719_v63 }
 0x133   :  { %v748_v45 = vsel %vm746_vm8, %v739_v36, %v741_v5  ;;  %v757_v48 = vadd.f32 %v747_v42, %v720_v1 }
 0x134   :  { %v758_v53 = vadd.f32 %v748_v45, %v721_v47 }
 0x139   :  { %v743_v34 = vpop.permute.xlu1 %742 }
 0x13a   :  { %v779_v33 = vpop.permute.xlu0 %778  ;;  %v815_v26 = vpop.permute.xlu2 %814  ;;  %v749_v10 = vsel %vm746_vm8, %v741_v5, %v743_v34  ;;  %v750_v60 = vsel %vm746_vm8, %v743_v34, %v745_v30 }
 0x13b   :  { %v797_v32 = vadd.f32 %v779_v33, %v756_v43  ;;  %v759_v12 = vadd.f32 %v749_v10, %v722_v18  ;;  %v760_v21 = vadd.f32 %v750_v60, %v723_v27 }
 0x13d   :  { %v834_v54 = vadd.f32 %v815_v26, %v797_v32 }
 0x141   :  { %v781_v35 = vpop.permute.xlu1 %780 }
 0x142   :  { %v785_v19 = vpop.permute.xlu0 %784  ;;  %v821_v38 = vpop.permute.xlu2 %820  ;;  %v788_v46 = vsel %vm746_vm8, %v779_v33, %v781_v35  ;;  %v789_v50 = vsel %vm746_vm8, %v781_v35, %v783_v7 }
 0x143   :  { %v798_v55 = vadd.f32 %v788_v46, %v757_v48  ;;  %v799_v2 = vadd.f32 %v789_v50, %v758_v53  ;;  %v790_v20 = vsel %vm746_vm8, %v783_v7, %v785_v19 }
 0x144   :  { %v800_v31 = vadd.f32 %v790_v20, %v759_v12 }
 0x149   :  { %v787_v24 = vpop.permute.xlu1 %786 }
 0x14a   :  { %v817_v37 = vpop.permute.xlu0 %816  ;;  %v859_v49 = vpop.permute.xlu2 %858  ;;  %v791_v3 = vsel %vm746_vm8, %v785_v19, %v787_v24 }
 0x14b   :  { %v825_v51 = vsel %vm824_vm9, %v815_v26, %v817_v37  ;;  %v801_v5 = vadd.f32 %v791_v3, %v760_v21 }
 0x14c   :  { %v835_v59 = vadd.f32 %v825_v51, %v798_v55 }
 0x151   :  { %v819_v28 = vpop.permute.xlu1 %818 }
 0x152   :  { %v823_v8 = vpop.permute.xlu0 %822  ;;  %v826_v9 = vsel %vm824_vm9, %v817_v37, %v819_v28  ;;  %v827_v11 = vsel %vm824_vm9, %v819_v28, %v821_v38  ;;  %v865_v35 = vpop.permute.xlu2 %864 }
 0x153   :  { %v836_v29 = vadd.f32 %v826_v9, %v799_v2  ;;  %v828_v6 = vsel %vm824_vm9, %v821_v38, %v823_v8  ;;  %v837_v7 = vadd.f32 %v827_v11, %v800_v31 }
 0x154   :  { %v838_v26 = vadd.f32 %v828_v6, %v801_v5 }
 0x159   :  { %v857_v44 = vpop.permute.xlu1 %856 }
 0x15a   :  { %v875_v61 = vadd.f32 %v857_v44, %v834_v54  ;;  %v866_v62 = vsel %vm824_vm9, %v857_v44, %v859_v49  ;;  %v861_v0 = vpop.permute.xlu0 %860 }
 0x15b   :  { %v876_v16 = vadd.f32 %v866_v62, %v835_v59  ;;  %v867_v17 = vsel %vm824_vm9, %v859_v49, %v861_v0 }
 0x15c   :  { %v880_v23 = vsub.f32 0.0, %v875_v61  ;;  %v877_v36 = vadd.f32 %v867_v17, %v836_v29 }
 0x15d   :  { %v881_v25 = vsub.f32 0.0, %v876_v16 }
 0x15e   :  { %v885_v30 = vmul.f32 1.442695, %v880_v23  ;;  %v882_v33 = vsub.f32 0.0, %v877_v36 }
 0x15f   :  { %v887_v34 = vmul.f32 1.442695, %v881_v25 }
 0x160   :  { %1174 = vpow2.f32 %v885_v30  ;;  %v889_v19 = vmul.f32 1.442695, %v882_v33 }
 0x161   :  { %1176 = vpow2.f32 %v887_v34  ;;  %v863_v24 = vpop.permute.xlu1 %862 }
 0x162   :  { %v868_v37 = vsel %vm824_vm9, %v861_v0, %v863_v24  ;;  %v869_v52 = vsel %vm824_vm9, %v863_v24, %v865_v35  ;;  %1178 = vpow2.f32 %v889_v19 }
 0x163   :  { %v878_v63 = vadd.f32 %v868_v37, %v837_v7  ;;  %v879_v56 = vadd.f32 %v869_v52, %v838_v26 }
 0x165   :  { %v883_v38 = vsub.f32 0.0, %v878_v63  ;;  %v884_v39 = vsub.f32 0.0, %v879_v56 }
 0x166   :  { %v1175_v40 = vpop.eup %1174 }
 0x167   :  { %v1177_v28 = vpop.eup %1176  ;;  %v895_v41 = vadd.f32 1.0, %v1175_v40  ;;  %v891_v42 = vmul.f32 1.442695, %v883_v38  ;;  %v893_v13 = vmul.f32 1.442695, %v884_v39 }
 0x168   :  { %v896_v43 = vadd.f32 1.0, %v1177_v28  ;;  %v1179_v1 = vpop.eup %1178  ;;  %v1024_v28 = vpop.permute.xlu0 %1023 }
 0x169   :  { %1180 = vrcp.f32 %v895_v41  ;;  %v897_v8 = vadd.f32 1.0, %v1179_v1  ;;  %vm905_vm10 = vweird.f32 %v895_v41  ;;  %v909_v54 = vand.u32 2147483647, %v895_v41  ;;  %v1026_v40 = vpop.permute.xlu1 %1025 }
 0x16a   :  { %1182 = vrcp.f32 %v896_v43  ;;  %v925_v57 = vand.u32 2147483648, %v896_v43  ;;  %v923_v14 = vand.u32 2147483647, %v896_v43  ;;  %v911_v59 = vand.u32 2147483648, %v895_v41 }
 0x16b   :  { %1184 = vpow2.f32 %v891_v42  ;;  %vm919_vm13 = vweird.f32 %v896_v43  ;;  %v939_v10 = vand.u32 2147483648, %v897_v8  ;;  %v937_v62 = vand.u32 2147483647, %v897_v8 }
 0x16c   :  { %1186 = vpow2.f32 %v893_v13  ;;  %v926_v60 = vor.u32 1.1754944e-38, %v925_v57  ;;  %vm924_vm2 = vcmp.eq.f32.partialorder %v923_v14, 8.507059e+37  ;;  %vm933_vm6 = vweird.f32 %v897_v8 }
 0x16d   :  { %1188 = vrcp.f32 %v897_v8  ;;  %v912_v3 = vor.u32 1.1754944e-38, %v911_v59  ;;  %v940_v23 = vor.u32 1.1754944e-38, %v939_v10  ;;  %vm910_vm8 = vcmp.eq.f32.partialorder %v909_v54, 8.507059e+37 }
 0x16e   :  { %vm938_vm9 = vcmp.eq.f32.partialorder %v937_v62, 8.507059e+37 }
 0x16f   :  { %v1181_v45 = vpop.eup %1180 }
 0x170   :  { %v1183_v32 = vpop.eup %1182  ;;  %v901_v46 = vmul.f32 %v1181_v45, %v895_v41  ;;  %vm906_vm12 = vweird.f32 %v1181_v45  ;;  %v1030_v57 = vpop.permute.xlu0 %1029 }
 0x171   :  { %v1185_v47 = vpop.eup %1184  ;;  %v915_v48 = vmul.f32 %v1183_v32, %v896_v43  ;;  %vm920_vm11 = vweird.f32 %v1183_v32  ;;  %vm1721_vm1 = vmor %vm905_vm10, %vm906_vm12  ;;  %vm988_vm10 = vcmask 1042433  }
 0x172   :  { %v1187_v49 = vpop.eup %1186  ;;  %v902_v4 = vsub.f32 1.0, %v901_v46  ;;  %v1714_v22 = vadd.f32 1.0, %v1185_v47  ;;  %vm921_vm14 = vmor %vm919_vm13, %vm920_vm11 }
 0x173   :  { %v1189_v50 = vpop.eup %1188  ;;  %v916_v51 = vsub.f32 1.0, %v915_v48  ;;  %v1716_v53 = vadd.f32 1.0, %v1187_v49  ;;  %v1039_v48 = vsel %vm519_vm5, %v1024_v28, %v1026_v40 }
 0x174   :  { %v903_v55 = vmul.f32 %v1181_v45, %v902_v4  ;;  %v929_v15 = vmul.f32 %v1189_v50, %v897_v8  ;;  %1190 = vrcp.f32 %v1714_v22  ;;  %vm934_vm15 = vweird.f32 %v1189_v50 }
 0x175   :  { %v917_v9 = vmul.f32 %v1183_v32, %v916_v51  ;;  %1192 = vrcp.f32 %v1716_v53  ;;  %vm935_vm7 = vmor %vm933_vm6, %vm934_vm15  ;;  %v953_v31 = vand.u32 2147483648, %v1714_v22  ;;  %v951_v7 = vand.u32 2147483647, %v1714_v22 }
 0x176   :  { %v904_v58 = vadd.f32 %v1181_v45, %v903_v55  ;;  %v930_v2 = vsub.f32 1.0, %v929_v15  ;;  %vm947_vm12 = vweird.f32 %v1714_v22  ;;  %v967_v19 = vand.u32 2147483648, %v1716_v53  ;;  %v1032_v55 = vpop.permute.xlu1 %1031 }
 0x177   :  { %v918_v44 = vadd.f32 %v1183_v32, %v917_v9  ;;  %v965_v56 = vand.u32 2147483647, %v1716_v53  ;;  %v954_v38 = vor.u32 1.1754944e-38, %v953_v31  ;;  %vm952_vm15 = vcmp.eq.f32.partialorder %v951_v7, 8.507059e+37 }
 0x178   :  { %v931_v61 = vmul.f32 %v1189_v50, %v930_v2  ;;  %v908_v0 = vsel %vm1721_vm1, %v1181_v45, %v904_v58  ;;  %v968_v42 = vor.u32 1.1754944e-38, %v967_v19  ;;  %vm985_vm6 = vcmask 1042432  }
 0x179   :  { %v922_v27 = vsel %vm921_vm14, %v1183_v32, %v918_v44  ;;  %v913_v6 = vsel %vm910_vm8, %v912_v3, %v908_v0  ;;  %v1028_v32 = vpop.permute.xlu2 %1027  ;;  %vm1095_vm8 = vcmask 31744  }
 0x17a   :  { %v1191_v29 = vpop.eup %1190  ;;  %v932_v16 = vadd.f32 %v1189_v50, %v931_v61  ;;  %v927_v20 = vsel %vm924_vm2, %v926_v60, %v922_v27  ;;  %vm966_vm2 = vcmp.eq.f32.partialorder %v965_v56, 8.507059e+37  ;;  %v1040_v49 = vsel %vm519_vm5, %v1026_v40, %v1028_v32  ;;  %v1036_v27 = vpop.permute.xlu0 %1035 }
 0x17b   :  { %v943_v17 = vmul.f32 %v1191_v29, %v1714_v22  ;;  %v975_v12 = vrot.slane %v927_v20, 7  ;;  %v1193_v21 = vpop.eup %1192  ;;  %vm948_vm11 = vweird.f32 %v1191_v29  ;;  %v1041_v44 = vsel %vm519_vm5, %v1028_v32, %v1030_v57 }
 0x17c   :  { %v936_v25 = vsel %vm935_vm7, %v1189_v50, %v932_v16  ;;  %v957_v11 = vmul.f32 %v1193_v21, %v1716_v53  ;;  %vm962_vm13 = vweird.f32 %v1193_v21  ;;  %vm949_vm14 = vmor %vm947_vm12, %vm948_vm11  ;;  %vm992_vm7 = vcmask 1043457  }
 0x17d   :  { %v944_v36 = vsub.f32 1.0, %v943_v17  ;;  %v941_v30 = vsel %vm938_vm9, %v940_v23, %v936_v25  ;;  %v980_v34 = vsel %vm979_vm3, %v913_v6, %v975_v12  ;;  %v987_v33 = vsel %vm180_vm0, %v913_v6, %v975_v12 }
 0x17e   :  { %v976_v5 = vrot.slane %v941_v30, 6  ;;  %v958_v26 = vsub.f32 1.0, %v957_v11  ;;  %vm961_vm0 = vweird.f32 %v1716_v53  ;;  %vm983_vm3 = vcmask 1043459   ;;  %v1038_v18 = vpop.permute.xlu1 %1037 }
 0x17f   :  { %v945_v35 = vmul.f32 %v1191_v29, %v944_v36  ;;  %vm963_vm1 = vmor %vm961_vm0, %vm962_vm13  ;;  %v1044_v20 = vsel %vm519_vm5, %v1036_v27, %v1038_v18 }
 0x180   :  { %v982_v24 = vsel %vm981_vm4, %v980_v34, %v976_v5  ;;  %v989_v37 = vsel %vm988_vm10, %v987_v33, %v976_v5  ;;  %v959_v63 = vmul.f32 %v1193_v21, %v958_v26  ;;  %vm990_vm4 = vcmask 1044484  }
 0x181   :  { %v946_v52 = vadd.f32 %v1191_v29, %v945_v35  ;;  %v1034_v61 = vpop.permute.xlu2 %1033 }
 0x182   :  { %v960_v39 = vadd.f32 %v1193_v21, %v959_v63  ;;  %v1043_v0 = vsel %vm519_vm5, %v1034_v61, %v1036_v27  ;;  %v1042_v23 = vsel %vm519_vm5, %v1032_v55, %v1034_v61 }
 0x183   :  { %v950_v41 = vsel %vm949_vm14, %v1191_v29, %v946_v52 }
 0x184   :  { %v955_v43 = vsel %vm952_vm15, %v954_v38, %v950_v41  ;;  %v964_v13 = vsel %vm963_vm1, %v1193_v21, %v960_v39 }
 0x185   :  { %v977_v1 = vrot.slane %v955_v43, 5  ;;  %v969_v8 = vsel %vm966_vm2, %v968_v42, %v964_v13 }
 0x186   :  { %v978_v45 = vrot.slane %v969_v8, 4 }
 0x188   :  { %v984_v46 = vsel %vm983_vm3, %v977_v1, %v978_v45  ;;  %v991_v47 = vsel %vm990_vm4, %v977_v1, %v978_v45 }
 0x189   :  { %v986_v4 = vsel %vm985_vm6, %v982_v24, %v984_v46  ;;  %v993_v22 = vsel %vm992_vm7, %v989_v37, %v991_v47 }
 0x18a   :  { %v997_v50 = vperm.slane %v986_v4, 2  ;;  %v996_v51 = vperm.slane %v986_v4, 1  ;;  %v995_v53 = vperm.slane %v986_v4, 0  ;;  %v994_v14 = vrot.slane %v993_v22, 1 }
 0x18b   :  { %v999_v2 = vperm.slane %v986_v4, 4  ;;  %v998_v59 = vperm.slane %v986_v4, 3 }
 0x18c   :  { %v1057_v15 = vmul.f32 %v1040_v49, %v997_v50  ;;  %v1056_v54 = vmul.f32 %v1039_v48, %v996_v51  ;;  %v1055_v9 = vmul.f32 %v1024_v28, %v995_v53  ;;  %v1000_v58 = vperm.slane %v994_v14, 0 }
 0x18d   :  { %v1059_v60 = vmul.f32 %v1030_v57, %v999_v2  ;;  %v1058_v62 = vmul.f32 %v1041_v44, %v998_v59  ;;  %v1003_v29 = vperm.slane %v994_v14, 3  ;;  %v1002_v16 = vperm.slane %v994_v14, 2 }
 0x18e   :  { %1079 = vrot.lane.b32.xlu1 %v1057_v15, %s1292_s0  ;;  %1077 = vrot.lane.b32.xlu0 %v1056_v54, %s1292_s0  ;;  %v1060_v10 = vmul.f32 %v1032_v55, %v1000_v58  ;;  %v1001_v3 = vperm.slane %v994_v14, 1  ;;  %v1004_v25 = vperm.slane %v994_v14, 4 }
 0x18f   :  { %1075 = vrot.lane.b32.xlu2 %v1055_v9, %s1292_s0  ;;  %v1063_v17 = vmul.f32 %v1044_v20, %v1003_v29  ;;  %v1062_v12 = vmul.f32 %v1043_v0, %v1002_v16 }
 0x190   :  { %v1061_v21 = vmul.f32 %v1042_v23, %v1001_v3  ;;  %v1064_v36 = vmul.f32 %v1038_v18, %v1004_v25 }
 0x196   :  { %1085 = vrot.lane.b32.xlu1 %v1060_v10, %s1292_s0  ;;  %1083 = vrot.lane.b32.xlu0 %v1059_v60, %s1292_s0 }
 0x197   :  { %1081 = vrot.lane.b32.xlu2 %v1058_v62, %s1292_s0 }
 0x19e   :  { %1091 = vrot.lane.b32.xlu1 %v1063_v17, %s1292_s0  ;;  %1089 = vrot.lane.b32.xlu0 %v1062_v12, %s1292_s0 }
 0x19f   :  { %1087 = vrot.lane.b32.xlu2 %v1061_v21, %s1292_s0 }
 0x1a7   :  { %1093 = vrot.lane.b32.xlu2 %v1064_v36, %s1292_s0  ;;  %s1302_s0 = smov [#allocation9]  }
 0x1a8   :  { %s1124_s1 = sshll.u32 %s1302_s0, 4  ;;  %s1125_s1 = int_to_ptr.vmem [resolvable:$true] %s1124_s1 }
 0x1e9   :  { %v1076_v11 = vpop.permute.xlu2 %1075 }
 0x1f1   :  { %v1082_v6 = vpop.permute.xlu2 %1081 }
 0x1f9   :  { %v1088_v35 = vpop.permute.xlu2 %1087 }
 0x200   :  { %v1080_v30 = vpop.permute.xlu1 %1079  ;;  %v1078_v31 = vpop.permute.xlu0 %1077 }
 0x201   :  { %v1098_v5 = vsel %vm1095_vm8, %v1080_v30, %v1082_v6  ;;  %v1096_v34 = vsel %vm1095_vm8, %v1076_v11, %v1078_v31  ;;  %v1097_v33 = vsel %vm1095_vm8, %v1078_v31, %v1080_v30  ;;  %v1094_v37 = vpop.permute.xlu2 %1093 }
 0x202   :  { %1114 = vst [vmem:[#allocation9 + $0x10] sm:$0xff] %v1098_v5 }
 0x203   :  { %1112 = vst [vmem:[#allocation9] sm:$0xff] %v1096_v34 }
 0x204   :  { %1113 = vst [vmem:[#allocation9 + $0x8] sm:$0xff] %v1097_v33 }
 0x208   :  { %v1086_v7 = vpop.permute.xlu1 %1085  ;;  %v1084_v26 = vpop.permute.xlu0 %1083 }
 0x209   :  { %v1100_v19 = vsel %vm1095_vm8, %v1086_v7, %v1088_v35  ;;  %v1099_v24 = vsel %vm1095_vm8, %v1082_v6, %v1084_v26 }
 0x20a   :  { %1116 = vst [vmem:[#allocation9 + $0x20] sm:$0xff] %v1100_v19 }
 0x20b   :  { %1115 = vst [vmem:[#allocation9 + $0x18] sm:$0xff] %v1099_v24 }
 0x210   :  { %v1092_v52 = vpop.permute.xlu1 %1091  ;;  %v1090_v63 = vpop.permute.xlu0 %1089 }
 0x211   :  { %v1103_v56 = vsel %vm1095_vm8, %v1092_v52, %v1094_v37  ;;  %v1101_v38 = vsel %vm1095_vm8, %v1088_v35, %v1090_v63  ;;  %v1102_v39 = vsel %vm1095_vm8, %v1090_v63, %v1092_v52 }
 0x212   :  { %1119 = vst [vmem:[#allocation9 + $0x38] sm:$0xff] %v1103_v56 }
 0x213   :  { %1117 = vst [vmem:[#allocation9 + $0x28] sm:$0xff] %v1101_v38 }
 0x214   :  { %1118 = vst [vmem:[#allocation9 + $0x30] sm:$0xff] %v1102_v39 }
 0x215   :  { %1132 = dma.vmem_to_hbm [thread:$0]  %s1125_s1, 1024, %s1127_s29, [#allocation4], %s1288_s20, %s1288_s20, %s1289_s21  }
 0x216   :  { %1285 = dma.done.wait [#allocation4], 1024  }
 0x217   :  { %1286 = vsyncadd [#allocation4], 4294966272 }
 0x218   :  { %1137 = vsyncpa [#allocation3], 1 }
 0x219   :  { %1138 = vsyncpa [#allocation7], 1 }
 0x21a   :  { %1139 = vsyncpa [#allocation4], 1 }
 0x21b   :  { %1140 = vsyncpa [#allocation5], 1 }

</bundles_post_ra>
